<compile_context>
chip_gen: v7x
topology: tpu7x:2x2x1
jax: 0.10.0
libtpu: 0.0.40
codegen_flags: <defaults>
</compile_context>

<pallas_src>
import functools

import jax
import jax.numpy as jnp
import numpy as np
from jax import lax
from jax.experimental import pallas as pl
from jax.experimental.pallas import tpu as pltpu


def _make_kernel(heads: int, q_tile: int, n_valid: int, n_pad: int):
    """Per-(batch, query-tile) talking-heads attention kernel."""
    needs_mask = n_pad != n_valid
    NEG = jnp.float32(-1e30)

    def kernel(x_ref, wq_ref, wk_ref, wv_ref, lw_ref, ww_ref, wo_ref, bo_ref,
               o_ref, k_scr, v_scr):
        qi = pl.program_id(1)

        # --- per-batch K/V projection: computed once per batch, cached in VMEM scratch ---
        @pl.when(qi == 0)
        def _():
            x_b = x_ref[0].astype(jnp.bfloat16)                                   # (N, D)
            k_scr[...] = jnp.dot(x_b, wk_ref[...],
                                 preferred_element_type=jnp.float32).astype(jnp.bfloat16)
            v_scr[...] = jnp.dot(x_b, wv_ref[...],
                                 preferred_element_type=jnp.float32).astype(jnp.bfloat16)

        # --- query rows for this tile, sliced from the resident sequence block ---
        row0 = pl.multiple_of(qi * q_tile, q_tile)
        xq = x_ref[0, pl.ds(row0, q_tile), :].astype(jnp.bfloat16)                # (TQ, D)
        q_all = jnp.dot(xq, wq_ref[...], preferred_element_type=jnp.float32)      # (TQ, nkq) f32

        k_all = k_scr[...]                                                        # (N, nkq) bf16
        v_all = v_scr[...]                                                        # (N, nkv) bf16
        lw = lw_ref[...]                                                          # (heads, nkq) f32
        ww = ww_ref[...]                                                          # (heads, nkv) f32

        if needs_mask:
            col = lax.broadcasted_iota(jnp.int32, (q_tile, n_pad), 1)
            key_mask = col < n_valid

        nkv = ww.shape[1]
        o_acc = jnp.zeros((q_tile, nkv), jnp.float32)
        for g in range(heads):  # unrolled: `heads` is small and static
            # L head-mix + 1/sqrt(hd) scale folded into the query side -> one fat MXU matmul.
            qg = (q_all * lw[g:g + 1, :]).astype(jnp.bfloat16)                    # (TQ, nkq)
            s = lax.dot_general(qg, k_all, (((1,), (1,)), ((), ())),
                                preferred_element_type=jnp.float32)               # (TQ, N)
            if needs_mask:
                s = jnp.where(key_mask, s, NEG)
            m = jnp.max(s, axis=-1, keepdims=True)
            e = jnp.exp(s - m)
            inv = pl.reciprocal(jnp.sum(e, axis=-1, keepdims=True), approx=True)  # EUP slot
            p = (e * inv).astype(jnp.bfloat16)                                    # (TQ, N)
            # attention @ V over the full value slab (fat contraction over N), then fold the
            # W head-mix as a cheap per-column scaling of the small (TQ, nkv) result.
            pv = jnp.dot(p, v_all, preferred_element_type=jnp.float32)            # (TQ, nkv)
            o_acc = o_acc + pv * ww[g:g + 1, :]

        # --- single wide, lane-dense output projection + bias ---
        out = jnp.dot(o_acc.astype(jnp.bfloat16), wo_ref[...],
                      preferred_element_type=jnp.float32) + bo_ref[...]
        o_ref[0] = out.astype(o_ref.dtype)

    return kernel


def talking_head_attention(x, Wq, Wk, Wv, Lw, Ww, Wo, bo,
                           *, heads: int, heads_k: int, heads_v: int, head_dim: int,
                           q_tile: int | None = None):
    """x: (B, N, D).  Wq/Wk: (D, heads_k*hd), Wv: (D, heads_v*hd),
    Lw: (heads, heads_k), Ww: (heads_v, heads), Wo: (heads_v*hd, D), bo: (D,)."""
    B, N, D = x.shape
    nkq = heads_k * head_dim
    nkv = heads_v * head_dim
    scale = float(head_dim) ** -0.5

    # Query tile: 128 MXU-friendly rows unless the sequence is shorter; pad + mask otherwise.
    if q_tile is None:
        q_tile = min(128, N)
    num_q = int(pl.cdiv(N, q_tile))
    n_pad = num_q * q_tile
    x_in = x if n_pad == N else jnp.pad(x, ((0, 0), (0, n_pad - N), (0, 0)))

    # Fold scale + L into a per-softmax-head query scaling row, and W into a per-softmax-head
    # output scaling row (expanded across head_dim columns so they broadcast lane-dense).
    lw_exp = jnp.repeat((Lw * scale).astype(jnp.float32), head_dim, axis=1)       # (heads, nkq)
    ww_exp = jnp.repeat(Ww.T.astype(jnp.float32), head_dim, axis=1)               # (heads, nkv)

    # bf16 MXU operands (f32 accumulation inside the kernel).
    Wq_b = Wq.astype(jnp.bfloat16)
    Wk_b = Wk.astype(jnp.bfloat16)
    Wv_b = Wv.astype(jnp.bfloat16)
    Wo_b = Wo.astype(jnp.bfloat16)
    bo2 = bo.reshape(1, D).astype(jnp.float32)

    kernel = _make_kernel(heads, q_tile, N, n_pad)

    grid_spec = pltpu.PrefetchScalarGridSpec(
        num_scalar_prefetch=0,
        grid=(B, num_q),
        in_specs=[
            pl.BlockSpec((1, n_pad, D), lambda b, qi: (b, 0, 0)),   # x: full sequence, resident per batch
            pl.BlockSpec((D, nkq), lambda b, qi: (0, 0)),           # Wq (resident)
            pl.BlockSpec((D, nkq), lambda b, qi: (0, 0)),           # Wk
            pl.BlockSpec((D, nkv), lambda b, qi: (0, 0)),           # Wv
            pl.BlockSpec((heads, nkq), lambda b, qi: (0, 0)),       # L rows (scaled, expanded)
            pl.BlockSpec((heads, nkv), lambda b, qi: (0, 0)),       # W rows (expanded)
            pl.BlockSpec((nkv, D), lambda b, qi: (0, 0)),           # output projection
            pl.BlockSpec((1, D), lambda b, qi: (0, 0)),             # output bias
        ],
        out_specs=pl.BlockSpec((1, q_tile, D), lambda b, qi: (b, qi, 0)),
        scratch_shapes=[
            pltpu.VMEM((n_pad, nkq), jnp.bfloat16),                 # cached per-batch K
            pltpu.VMEM((n_pad, nkv), jnp.bfloat16),                 # cached per-batch V
        ],
    )

    # Generation-aware VMEM budget: physical capacity minus headroom (v7x is 64 MiB).
    try:
        vmem_cap = int(getattr(pltpu.get_tpu_info(), "vmem_capacity_bytes", 64 << 20))
    except Exception:
        vmem_cap = 64 << 20
    lane = lambda c: ((c + 127) // 128) * 128
    fp, bf = 4, 2
    weight_bytes = (bf * (2 * D * lane(nkq) + D * lane(nkv) + nkv * lane(D))
                    + fp * (heads * (lane(nkq) + lane(nkv)) + lane(D)))
    io_bytes = 2 * fp * (n_pad + q_tile) * lane(D)                  # double-buffered x in / out
    scratch_bytes = bf * n_pad * (lane(nkq) + lane(nkv))
    work_bytes = fp * (3 * q_tile * lane(n_pad)
                       + 2 * q_tile * (lane(nkq) + lane(nkv) + lane(D)))
    est = 2 * (weight_bytes + io_bytes + scratch_bytes + work_bytes)
    vmem_limit = int(min(max(est, 32 << 20), vmem_cap - (8 << 20)))

    out = pl.pallas_call(
        kernel,
        out_shape=jax.ShapeDtypeStruct((B, n_pad, D), x.dtype),
        grid_spec=grid_spec,
        compiler_params=pltpu.CompilerParams(
            # qi must stay sequential per batch so the @pl.when(qi == 0) K/V projection into
            # persistent scratch is coherent; only the batch axis is megacore-sharded.
            dimension_semantics=("parallel", "arbitrary"),
            vmem_limit_bytes=vmem_limit,
        ),
    )(x_in, Wq_b, Wk_b, Wv_b, lw_exp, ww_exp, Wo_b, bo2)

    return out if n_pad == N else out[:, :N, :]


def reference(x, Wq, Wk, Wv, Lw, Ww, Wo, bo, *, heads, heads_k, heads_v, head_dim):
    """Pure-JAX (f32) mirror of the PyTorch forward pass (attention_mask=None, eval mode)."""
    B, N, D = x.shape
    scale = float(head_dim) ** -0.5
    q = (x @ Wq).reshape(B, N, heads_k, head_dim).transpose(0, 2, 1, 3)
    k = (x @ Wk).reshape(B, N, heads_k, head_dim).transpose(0, 2, 1, 3) * scale
    v = (x @ Wv).reshape(B, N, heads_v, head_dim).transpose(0, 2, 1, 3)
    attn = jnp.einsum('bhnd,bhmd->bhnm', q, k)
    attn = jnp.einsum('gh,bhnm->bgnm', Lw, attn)        # L: 1x1 conv over heads
    attn = jax.nn.softmax(attn, axis=-1)
    attn = jnp.einsum('gh,bhnm->bgnm', Ww, attn)        # W: 1x1 conv over heads
    out = jnp.einsum('bhnm,bhmd->bhnd', attn, v)
    out = out.transpose(0, 2, 1, 3).reshape(B, N, heads_v * head_dim)
    return out @ Wo + bo


if __name__ == "__main__":
    B, N, DIM = 2, 8, 32
    HEADS, HEADS_K, HEADS_V = 4, 2, 3
    HEAD_DIM = DIM // HEADS  # 8 (module default)

    key = jax.random.PRNGKey(0)
    kx, kq, kk, kv, kl, kw, ko, kb = jax.random.split(key, 8)

    x = jax.random.normal(kx, (B, N, DIM), jnp.float32)
    Wq = jax.random.normal(kq, (DIM, HEADS_K * HEAD_DIM), jnp.float32) / np.sqrt(DIM)
    Wk = jax.random.normal(kk, (DIM, HEADS_K * HEAD_DIM), jnp.float32) / np.sqrt(DIM)
    Wv = jax.random.normal(kv, (DIM, HEADS_V * HEAD_DIM), jnp.float32) / np.sqrt(DIM)
    Lw = jax.random.normal(kl, (HEADS, HEADS_K), jnp.float32) / np.sqrt(HEADS_K)
    Ww = jax.random.normal(kw, (HEADS_V, HEADS), jnp.float32) / np.sqrt(HEADS)
    Wo = jax.random.normal(ko, (HEADS_V * HEAD_DIM, DIM), jnp.float32) / np.sqrt(HEADS_V * HEAD_DIM)
    bo = jax.random.normal(kb, (DIM,), jnp.float32) * 0.01

    fn = functools.partial(talking_head_attention,
                           heads=HEADS, heads_k=HEADS_K, heads_v=HEADS_V, head_dim=HEAD_DIM)

    out = fn(x, Wq, Wk, Wv, Lw, Ww, Wo, bo)
    jax.block_until_ready(out)

    ref = reference(x, Wq, Wk, Wv, Lw, Ww, Wo, bo,
                    heads=HEADS, heads_k=HEADS_K, heads_v=HEADS_V, head_dim=HEAD_DIM)
    jax.block_until_ready(ref)

    assert out.shape == (B, N, DIM)
    # Tolerance reflects bf16 MXU operands (f32 accumulation) vs. the f32 reference.
    np.testing.assert_allclose(np.asarray(out), np.asarray(ref), rtol=5e-2, atol=5e-2)
    print("KERNEL_OK")
</pallas_src>

<mosaic_0001>
module attributes {stable_mosaic.version = 11 : i64} {
  func.func @kernel(%arg0: i32, %arg1: i32, %arg2: memref<1x8x32xf32, #tpu.memory_space<vmem>>, %arg3: memref<32x16xbf16, #tpu.memory_space<vmem>>, %arg4: memref<32x16xbf16, #tpu.memory_space<vmem>>, %arg5: memref<32x24xbf16, #tpu.memory_space<vmem>>, %arg6: memref<4x16xf32, #tpu.memory_space<vmem>>, %arg7: memref<4x24xf32, #tpu.memory_space<vmem>>, %arg8: memref<24x32xbf16, #tpu.memory_space<vmem>>, %arg9: memref<1x32xf32, #tpu.memory_space<vmem>>, %arg10: memref<1x8x32xf32, #tpu.memory_space<vmem>>, %arg11: memref<8x16xbf16, #tpu.memory_space<vmem>>, %arg12: memref<8x24xbf16, #tpu.memory_space<vmem>>) attributes {dimension_semantics = [#tpu.dimension_semantics<parallel>, #tpu.dimension_semantics<arbitrary>], iteration_bounds = array<i64: 2, 1>, scalar_prefetch = 0 : i64, scratch_operands = 2 : i64, tpu.core_type = #tpu.core_type<tc>, window_params = [{transform_indices = @transform_0, window_bounds = array<i64: 1, 8, 32>}, {pipeline_mode = #tpu.pipeline_mode<synchronous>, transform_indices = @transform_1, window_bounds = array<i64: 32, 16>}, {pipeline_mode = #tpu.pipeline_mode<synchronous>, transform_indices = @transform_2, window_bounds = array<i64: 32, 16>}, {pipeline_mode = #tpu.pipeline_mode<synchronous>, transform_indices = @transform_3, window_bounds = array<i64: 32, 24>}, {pipeline_mode = #tpu.pipeline_mode<synchronous>, transform_indices = @transform_4, window_bounds = array<i64: 4, 16>}, {pipeline_mode = #tpu.pipeline_mode<synchronous>, transform_indices = @transform_5, window_bounds = array<i64: 4, 24>}, {pipeline_mode = #tpu.pipeline_mode<synchronous>, transform_indices = @transform_6, window_bounds = array<i64: 24, 32>}, {pipeline_mode = #tpu.pipeline_mode<synchronous>, transform_indices = @transform_7, window_bounds = array<i64: 1, 32>}, {transform_indices = @transform_8, window_bounds = array<i64: 1, 8, 32>}]} {
    %c0_i32 = arith.constant 0 : i32
    %0 = arith.cmpi eq, %arg1, %c0_i32 : i32
    %1 = arith.extui %0 : i1 to i32
    %c0_i32_0 = arith.constant 0 : i32
    %2 = arith.cmpi ne, %1, %c0_i32_0 : i32
    scf.if %2 {
      %c0_37 = arith.constant 0 : index
      %c0_38 = arith.constant 0 : index
      %c0_39 = arith.constant 0 : index
      %109 = vector.load %arg2[%c0_37, %c0_38, %c0_39] : memref<1x8x32xf32, #tpu.memory_space<vmem>>, vector<1x8x32xf32>
      %110 = vector.shape_cast %109 : vector<1x8x32xf32> to vector<8x32xf32>
      %111 = arith.truncf %110 : vector<8x32xf32> to vector<8x32xbf16>
      %c0_40 = arith.constant 0 : index
      %c0_41 = arith.constant 0 : index
      %112 = vector.load %arg4[%c0_40, %c0_41] : memref<32x16xbf16, #tpu.memory_space<vmem>>, vector<32x16xbf16>
      %cst_42 = arith.constant dense<0.000000e+00> : vector<8x16xf32>
      %113 = tpu.matmul %111, %112, %cst_42 {dimension_numbers = #tpu.dot_dimension_numbers<[1], [0], [0], [1], [0, 0, 1, 1], [], []>} : vector<8x32xbf16>, vector<32x16xbf16>, vector<8x16xf32> -> vector<8x16xf32>
      %114 = arith.truncf %113 : vector<8x16xf32> to vector<8x16xbf16>
      %c0_43 = arith.constant 0 : index
      %c0_44 = arith.constant 0 : index
      %115 = vector.load %arg11[%c0_43, %c0_44] : memref<8x16xbf16, #tpu.memory_space<vmem>>, vector<8x16xbf16>
      tpu.vector_store %arg11[%c0_43, %c0_44], %114 {strides = array<i32>} : memref<8x16xbf16, #tpu.memory_space<vmem>>, vector<8x16xbf16>,
      %c0_45 = arith.constant 0 : index
      %c0_46 = arith.constant 0 : index
      %116 = vector.load %arg5[%c0_45, %c0_46] : memref<32x24xbf16, #tpu.memory_space<vmem>>, vector<32x24xbf16>
      %cst_47 = arith.constant dense<0.000000e+00> : vector<8x24xf32>
      %117 = tpu.matmul %111, %116, %cst_47 {dimension_numbers = #tpu.dot_dimension_numbers<[1], [0], [0], [1], [0, 0, 1, 1], [], []>} : vector<8x32xbf16>, vector<32x24xbf16>, vector<8x24xf32> -> vector<8x24xf32>
      %118 = arith.truncf %117 : vector<8x24xf32> to vector<8x24xbf16>
      %c0_48 = arith.constant 0 : index
      %c0_49 = arith.constant 0 : index
      %119 = vector.load %arg12[%c0_48, %c0_49] : memref<8x24xbf16, #tpu.memory_space<vmem>>, vector<8x24xbf16>
      tpu.vector_store %arg12[%c0_48, %c0_49], %118 {strides = array<i32>} : memref<8x24xbf16, #tpu.memory_space<vmem>>, vector<8x24xbf16>,
    } else {
    }
    %c8_i32 = arith.constant 8 : i32
    %3 = arith.muli %arg1, %c8_i32 : i32
    %4 = tpu.assume_multiple %3, 8 : i32
    %c0 = arith.constant 0 : index
    %5 = arith.index_cast %4 : i32 to index
    %c0_1 = arith.constant 0 : index
    %6 = vector.load %arg2[%c0, %5, %c0_1] : memref<1x8x32xf32, #tpu.memory_space<vmem>>, vector<1x8x32xf32>
    %7 = vector.shape_cast %6 : vector<1x8x32xf32> to vector<8x32xf32>
    %8 = arith.truncf %7 : vector<8x32xf32> to vector<8x32xbf16>
    %c0_2 = arith.constant 0 : index
    %c0_3 = arith.constant 0 : index
    %9 = vector.load %arg3[%c0_2, %c0_3] : memref<32x16xbf16, #tpu.memory_space<vmem>>, vector<32x16xbf16>
    %cst = arith.constant dense<0.000000e+00> : vector<8x16xf32>
    %10 = tpu.matmul %8, %9, %cst {dimension_numbers = #tpu.dot_dimension_numbers<[1], [0], [0], [1], [0, 0, 1, 1], [], []>} : vector<8x32xbf16>, vector<32x16xbf16>, vector<8x16xf32> -> vector<8x16xf32>
    %c0_4 = arith.constant 0 : index
    %c0_5 = arith.constant 0 : index
    %11 = vector.load %arg11[%c0_4, %c0_5] : memref<8x16xbf16, #tpu.memory_space<vmem>>, vector<8x16xbf16>
    %c0_6 = arith.constant 0 : index
    %c0_7 = arith.constant 0 : index
    %12 = vector.load %arg12[%c0_6, %c0_7] : memref<8x24xbf16, #tpu.memory_space<vmem>>, vector<8x24xbf16>
    %c0_8 = arith.constant 0 : index
    %c0_9 = arith.constant 0 : index
    %13 = vector.load %arg6[%c0_8, %c0_9] : memref<4x16xf32, #tpu.memory_space<vmem>>, vector<4x16xf32>
    %c0_10 = arith.constant 0 : index
    %c0_11 = arith.constant 0 : index
    %14 = vector.load %arg7[%c0_10, %c0_11] : memref<4x24xf32, #tpu.memory_space<vmem>>, vector<4x24xf32>
    %cst_12 = arith.constant 0.000000e+00 : f32
    %15 = vector.broadcast %cst_12 : f32 to vector<8x24xf32>
    %16 = vector.extract_strided_slice %13 {offsets = [0, 0], sizes = [1, 16], strides = [1, 1]} : vector<4x16xf32> to vector<1x16xf32>
    %17 = vector.broadcast %16 : vector<1x16xf32> to vector<8x16xf32>
    %18 = arith.mulf %10, %17 : vector<8x16xf32>
    %19 = arith.truncf %18 : vector<8x16xf32> to vector<8x16xbf16>
    %cst_13 = arith.constant dense<0.000000e+00> : vector<8x8xf32>
    %20 = tpu.matmul %19, %11, %cst_13 {dimension_numbers = #tpu.dot_dimension_numbers<[1], [1], [0], [0], [0, 0, 1, 0], [], []>} : vector<8x16xbf16>, vector<8x16xbf16>, vector<8x8xf32> -> vector<8x8xf32>
    %cst_14 = arith.constant dense<0xFF800000> : vector<8xf32>
    %21 = vector.multi_reduction <maximumf>, %20, %cst_14 [1] : vector<8x8xf32> to vector<8xf32>
    %22 = vector.shape_cast %21 : vector<8xf32> to vector<8x1xf32>
    %23 = vector.broadcast %22 : vector<8x1xf32> to vector<8x8xf32>
    %24 = arith.subf %20, %23 : vector<8x8xf32>
    %25 = math.exp %24 : vector<8x8xf32>
    %cst_15 = arith.constant dense<0.000000e+00> : vector<8xf32>
    %26 = vector.multi_reduction <add>, %25, %cst_15 [1] : vector<8x8xf32> to vector<8xf32>
    %27 = vector.shape_cast %26 : vector<8xf32> to vector<8x1xf32>
    %28 = tpu.reciprocal %27 {approx = true} : vector<8x1xf32> -> vector<8x1xf32>
    %29 = vector.broadcast %28 : vector<8x1xf32> to vector<8x8xf32>
    %30 = arith.mulf %25, %29 : vector<8x8xf32>
    %31 = arith.truncf %30 : vector<8x8xf32> to vector<8x8xbf16>
    %cst_16 = arith.constant dense<0.000000e+00> : vector<8x24xf32>
    %32 = tpu.matmul %31, %12, %cst_16 {dimension_numbers = #tpu.dot_dimension_numbers<[1], [0], [0], [1], [0, 0, 1, 1], [], []>} : vector<8x8xbf16>, vector<8x24xbf16>, vector<8x24xf32> -> vector<8x24xf32>
    %33 = vector.extract_strided_slice %14 {offsets = [0, 0], sizes = [1, 24], strides = [1, 1]} : vector<4x24xf32> to vector<1x24xf32>
    %34 = vector.broadcast %33 : vector<1x24xf32> to vector<8x24xf32>
    %35 = arith.mulf %32, %34 : vector<8x24xf32>
    %36 = arith.addf %15, %35 : vector<8x24xf32>
    %37 = vector.extract_strided_slice %13 {offsets = [1, 0], sizes = [1, 16], strides = [1, 1]} : vector<4x16xf32> to vector<1x16xf32>
    %38 = vector.broadcast %37 : vector<1x16xf32> to vector<8x16xf32>
    %39 = arith.mulf %10, %38 : vector<8x16xf32>
    %40 = arith.truncf %39 : vector<8x16xf32> to vector<8x16xbf16>
    %cst_17 = arith.constant dense<0.000000e+00> : vector<8x8xf32>
    %41 = tpu.matmul %40, %11, %cst_17 {dimension_numbers = #tpu.dot_dimension_numbers<[1], [1], [0], [0], [0, 0, 1, 0], [], []>} : vector<8x16xbf16>, vector<8x16xbf16>, vector<8x8xf32> -> vector<8x8xf32>
    %cst_18 = arith.constant dense<0xFF800000> : vector<8xf32>
    %42 = vector.multi_reduction <maximumf>, %41, %cst_18 [1] : vector<8x8xf32> to vector<8xf32>
    %43 = vector.shape_cast %42 : vector<8xf32> to vector<8x1xf32>
    %44 = vector.broadcast %43 : vector<8x1xf32> to vector<8x8xf32>
    %45 = arith.subf %41, %44 : vector<8x8xf32>
    %46 = math.exp %45 : vector<8x8xf32>
    %cst_19 = arith.constant dense<0.000000e+00> : vector<8xf32>
    %47 = vector.multi_reduction <add>, %46, %cst_19 [1] : vector<8x8xf32> to vector<8xf32>
    %48 = vector.shape_cast %47 : vector<8xf32> to vector<8x1xf32>
    %49 = tpu.reciprocal %48 {approx = true} : vector<8x1xf32> -> vector<8x1xf32>
    %50 = vector.broadcast %49 : vector<8x1xf32> to vector<8x8xf32>
    %51 = arith.mulf %46, %50 : vector<8x8xf32>
    %52 = arith.truncf %51 : vector<8x8xf32> to vector<8x8xbf16>
    %cst_20 = arith.constant dense<0.000000e+00> : vector<8x24xf32>
    %53 = tpu.matmul %52, %12, %cst_20 {dimension_numbers = #tpu.dot_dimension_numbers<[1], [0], [0], [1], [0, 0, 1, 1], [], []>} : vector<8x8xbf16>, vector<8x24xbf16>, vector<8x24xf32> -> vector<8x24xf32>
    %54 = vector.extract_strided_slice %14 {offsets = [1, 0], sizes = [1, 24], strides = [1, 1]} : vector<4x24xf32> to vector<1x24xf32>
    %55 = vector.broadcast %54 : vector<1x24xf32> to vector<8x24xf32>
    %56 = arith.mulf %53, %55 : vector<8x24xf32>
    %57 = arith.addf %36, %56 : vector<8x24xf32>
    %58 = vector.extract_strided_slice %13 {offsets = [2, 0], sizes = [1, 16], strides = [1, 1]} : vector<4x16xf32> to vector<1x16xf32>
    %59 = vector.broadcast %58 : vector<1x16xf32> to vector<8x16xf32>
    %60 = arith.mulf %10, %59 : vector<8x16xf32>
    %61 = arith.truncf %60 : vector<8x16xf32> to vector<8x16xbf16>
    %cst_21 = arith.constant dense<0.000000e+00> : vector<8x8xf32>
    %62 = tpu.matmul %61, %11, %cst_21 {dimension_numbers = #tpu.dot_dimension_numbers<[1], [1], [0], [0], [0, 0, 1, 0], [], []>} : vector<8x16xbf16>, vector<8x16xbf16>, vector<8x8xf32> -> vector<8x8xf32>
    %cst_22 = arith.constant dense<0xFF800000> : vector<8xf32>
    %63 = vector.multi_reduction <maximumf>, %62, %cst_22 [1] : vector<8x8xf32> to vector<8xf32>
    %64 = vector.shape_cast %63 : vector<8xf32> to vector<8x1xf32>
    %65 = vector.broadcast %64 : vector<8x1xf32> to vector<8x8xf32>
    %66 = arith.subf %62, %65 : vector<8x8xf32>
    %67 = math.exp %66 : vector<8x8xf32>
    %cst_23 = arith.constant dense<0.000000e+00> : vector<8xf32>
    %68 = vector.multi_reduction <add>, %67, %cst_23 [1] : vector<8x8xf32> to vector<8xf32>
    %69 = vector.shape_cast %68 : vector<8xf32> to vector<8x1xf32>
    %70 = tpu.reciprocal %69 {approx = true} : vector<8x1xf32> -> vector<8x1xf32>
    %71 = vector.broadcast %70 : vector<8x1xf32> to vector<8x8xf32>
    %72 = arith.mulf %67, %71 : vector<8x8xf32>
    %73 = arith.truncf %72 : vector<8x8xf32> to vector<8x8xbf16>
    %cst_24 = arith.constant dense<0.000000e+00> : vector<8x24xf32>
    %74 = tpu.matmul %73, %12, %cst_24 {dimension_numbers = #tpu.dot_dimension_numbers<[1], [0], [0], [1], [0, 0, 1, 1], [], []>} : vector<8x8xbf16>, vector<8x24xbf16>, vector<8x24xf32> -> vector<8x24xf32>
    %75 = vector.extract_strided_slice %14 {offsets = [2, 0], sizes = [1, 24], strides = [1, 1]} : vector<4x24xf32> to vector<1x24xf32>
    %76 = vector.broadcast %75 : vector<1x24xf32> to vector<8x24xf32>
    %77 = arith.mulf %74, %76 : vector<8x24xf32>
    %78 = arith.addf %57, %77 : vector<8x24xf32>
    %79 = vector.extract_strided_slice %13 {offsets = [3, 0], sizes = [1, 16], strides = [1, 1]} : vector<4x16xf32> to vector<1x16xf32>
    %80 = vector.broadcast %79 : vector<1x16xf32> to vector<8x16xf32>
    %81 = arith.mulf %10, %80 : vector<8x16xf32>
    %82 = arith.truncf %81 : vector<8x16xf32> to vector<8x16xbf16>
    %cst_25 = arith.constant dense<0.000000e+00> : vector<8x8xf32>
    %83 = tpu.matmul %82, %11, %cst_25 {dimension_numbers = #tpu.dot_dimension_numbers<[1], [1], [0], [0], [0, 0, 1, 0], [], []>} : vector<8x16xbf16>, vector<8x16xbf16>, vector<8x8xf32> -> vector<8x8xf32>
    %cst_26 = arith.constant dense<0xFF800000> : vector<8xf32>
    %84 = vector.multi_reduction <maximumf>, %83, %cst_26 [1] : vector<8x8xf32> to vector<8xf32>
    %85 = vector.shape_cast %84 : vector<8xf32> to vector<8x1xf32>
    %86 = vector.broadcast %85 : vector<8x1xf32> to vector<8x8xf32>
    %87 = arith.subf %83, %86 : vector<8x8xf32>
    %88 = math.exp %87 : vector<8x8xf32>
    %cst_27 = arith.constant dense<0.000000e+00> : vector<8xf32>
    %89 = vector.multi_reduction <add>, %88, %cst_27 [1] : vector<8x8xf32> to vector<8xf32>
    %90 = vector.shape_cast %89 : vector<8xf32> to vector<8x1xf32>
    %91 = tpu.reciprocal %90 {approx = true} : vector<8x1xf32> -> vector<8x1xf32>
    %92 = vector.broadcast %91 : vector<8x1xf32> to vector<8x8xf32>
    %93 = arith.mulf %88, %92 : vector<8x8xf32>
    %94 = arith.truncf %93 : vector<8x8xf32> to vector<8x8xbf16>
    %cst_28 = arith.constant dense<0.000000e+00> : vector<8x24xf32>
    %95 = tpu.matmul %94, %12, %cst_28 {dimension_numbers = #tpu.dot_dimension_numbers<[1], [0], [0], [1], [0, 0, 1, 1], [], []>} : vector<8x8xbf16>, vector<8x24xbf16>, vector<8x24xf32> -> vector<8x24xf32>
    %96 = vector.extract_strided_slice %14 {offsets = [3, 0], sizes = [1, 24], strides = [1, 1]} : vector<4x24xf32> to vector<1x24xf32>
    %97 = vector.broadcast %96 : vector<1x24xf32> to vector<8x24xf32>
    %98 = arith.mulf %95, %97 : vector<8x24xf32>
    %99 = arith.addf %78, %98 : vector<8x24xf32>
    %100 = arith.truncf %99 : vector<8x24xf32> to vector<8x24xbf16>
    %c0_29 = arith.constant 0 : index
    %c0_30 = arith.constant 0 : index
    %101 = vector.load %arg8[%c0_29, %c0_30] : memref<24x32xbf16, #tpu.memory_space<vmem>>, vector<24x32xbf16>
    %cst_31 = arith.constant dense<0.000000e+00> : vector<8x32xf32>
    %102 = tpu.matmul %100, %101, %cst_31 {dimension_numbers = #tpu.dot_dimension_numbers<[1], [0], [0], [1], [0, 0, 1, 1], [], []>} : vector<8x24xbf16>, vector<24x32xbf16>, vector<8x32xf32> -> vector<8x32xf32>
    %c0_32 = arith.constant 0 : index
    %c0_33 = arith.constant 0 : index
    %103 = vector.load %arg9[%c0_32, %c0_33] : memref<1x32xf32, #tpu.memory_space<vmem>>, vector<1x32xf32>
    %104 = vector.broadcast %103 : vector<1x32xf32> to vector<8x32xf32>
    %105 = arith.addf %102, %104 : vector<8x32xf32>
    %c0_34 = arith.constant 0 : index
    %c0_35 = arith.constant 0 : index
    %c0_36 = arith.constant 0 : index
    %106 = vector.load %arg10[%c0_34, %c0_35, %c0_36] : memref<1x8x32xf32, #tpu.memory_space<vmem>>, vector<1x8x32xf32>
    %107 = vector.shape_cast %106 : vector<1x8x32xf32> to vector<8x32xf32>
    %108 = vector.shape_cast %105 : vector<8x32xf32> to vector<1x8x32xf32>
    tpu.vector_store %arg10[%c0_34, %c0_35, %c0_36], %108 {strides = array<i32>} : memref<1x8x32xf32, #tpu.memory_space<vmem>>, vector<1x8x32xf32>,
    return
  }
  func.func @transform_0(%arg0: i32, %arg1: i32) -> (i32, i32, i32) {
    %c0_i32 = arith.constant 0 : i32
    %c0_i32_0 = arith.constant 0 : i32
    %c0_i32_1 = arith.constant 0 : i32
    return %arg0, %c0_i32, %c0_i32_0 : i32, i32, i32
  }
  func.func @transform_1(%arg0: i32, %arg1: i32) -> (i32, i32) {
    %c0_i32 = arith.constant 0 : i32
    %c0_i32_0 = arith.constant 0 : i32
    %c0_i32_1 = arith.constant 0 : i32
    return %c0_i32, %c0_i32_0 : i32, i32
  }
  func.func @transform_2(%arg0: i32, %arg1: i32) -> (i32, i32) {
    %c0_i32 = arith.constant 0 : i32
    %c0_i32_0 = arith.constant 0 : i32
    %c0_i32_1 = arith.constant 0 : i32
    return %c0_i32, %c0_i32_0 : i32, i32
  }
  func.func @transform_3(%arg0: i32, %arg1: i32) -> (i32, i32) {
    %c0_i32 = arith.constant 0 : i32
    %c0_i32_0 = arith.constant 0 : i32
    %c0_i32_1 = arith.constant 0 : i32
    return %c0_i32, %c0_i32_0 : i32, i32
  }
  func.func @transform_4(%arg0: i32, %arg1: i32) -> (i32, i32) {
    %c0_i32 = arith.constant 0 : i32
    %c0_i32_0 = arith.constant 0 : i32
    %c0_i32_1 = arith.constant 0 : i32
    return %c0_i32, %c0_i32_0 : i32, i32
  }
  func.func @transform_5(%arg0: i32, %arg1: i32) -> (i32, i32) {
    %c0_i32 = arith.constant 0 : i32
    %c0_i32_0 = arith.constant 0 : i32
    %c0_i32_1 = arith.constant 0 : i32
    return %c0_i32, %c0_i32_0 : i32, i32
  }
  func.func @transform_6(%arg0: i32, %arg1: i32) -> (i32, i32) {
    %c0_i32 = arith.constant 0 : i32
    %c0_i32_0 = arith.constant 0 : i32
    %c0_i32_1 = arith.constant 0 : i32
    return %c0_i32, %c0_i32_0 : i32, i32
  }
  func.func @transform_7(%arg0: i32, %arg1: i32) -> (i32, i32) {
    %c0_i32 = arith.constant 0 : i32
    %c0_i32_0 = arith.constant 0 : i32
    %c0_i32_1 = arith.constant 0 : i32
    return %c0_i32, %c0_i32_0 : i32, i32
  }
  func.func @transform_8(%arg0: i32, %arg1: i32) -> (i32, i32, i32) {
    %c0_i32 = arith.constant 0 : i32
    %c0_i32_0 = arith.constant 0 : i32
    return %arg0, %arg1, %c0_i32 : i32, i32, i32
  }
}

</mosaic_0001>

<bundles_post_ra>
// kernel: tpu_custom_call.1
= control target key start
LH: loop header
LB: loop body
LE: loop exit
PB: predicated region body
PF: predicated region fallthrough
CT: control target
= control target key end

     0   :  { %13 = vsyncpa [#allocation5], 0  ;;  %s1699_s0 = inlined_call_operand.vmem [shape: f32[2,8,32], index: 0, kind: input, shape index: {}]   ;;  %s1700_s1 = inlined_call_operand.vmem [shape: bf16[32,16], index: 1, kind: input, shape index: {}]   ;;  %s1701_s2 = inlined_call_operand.vmem [shape: bf16[32,16], index: 2, kind: input, shape index: {}]   ;;  %s1702_s3 = inlined_call_operand.vmem [shape: bf16[32,24], index: 3, kind: input, shape index: {}]   ;;  %s1703_s4 = inlined_call_operand.vmem [shape: f32[4,16], index: 4, kind: input, shape index: {}]   ;;  %s1704_s5 = inlined_call_operand.vmem [shape: f32[4,24], index: 5, kind: input, shape index: {}]   ;;  %s1705_s6 = inlined_call_operand.vmem [shape: bf16[24,32], index: 6, kind: input, shape index: {}]   ;;  %s1706_s7 = inlined_call_operand.vmem [shape: f32[1,32], index: 7, kind: input, shape index: {}]   ;;  %s1707_s8 = inlined_call_operand.hbm [shape: f32[2,8,32], index: 8, kind: output, shape index: {}]  }
   0x1   :  { %15 = vsyncpa [#allocation5 + $0x1], 0  ;;  %s1463_s27 = smov 0   ;;  %s1465_s28 = smov 0  }
   0x2   :  { %s1467_s29 = smov 0   ;;  %s1469_s30 = smov 0  }
   0x3   :  { %s1471_s9 = smov 0   ;;  %s1473_s10 = smov 0  }
   0x4 LB: > { %s1114_s11 = sadd.s32 4294967295, %s1413_s10   ;;  %s1115_s12 = sadd.s32 4294967294, %s1413_s10   ;;  %s1413_s10 = sphi %s1473_s10, %s21_s10   ;;  %s1409_s9 = sphi %s1471_s9, %s1714_s9   ;;  %s1405_s30 = sphi %s1469_s30, %s1713_s30   ;;  %s1401_s29 = sphi %s1467_s29, %s1712_s29   ;;  %s1397_s28 = sphi %s1465_s28, %s1711_s28   ;;  %s1393_s27 = sphi %s1463_s27, %s1710_s27  }
   0x5   : > { %s33_s13 = sadd.s32 1, %s1409_s9  ;;  %s215_s14 = sadd.s32 1, %s1401_s29 }
   0x6   : > { %p35_p0 = scmp.ge.s32.totalorder %s33_s13, 2  ;;  %p225_p1 = scmp.ne.s32.totalorder %s1401_s29, %s1397_s28 }
   0x7   : > { %p226_p2 = scmp.eq.s32.totalorder %s1114_s11, 1  ;;  %p231_p3 = scmp.ne.s32.totalorder %s1397_s28, %s1393_s27 }
   0x8   : > { %s1716_s13 = smov (%p35_p0, %s33_s13), 0  ;;  %p232_p5 = scmp.eq.s32.totalorder %s1115_s12, 1 }
   0x9   : > { %p1503_p4 = por %p226_p2, %p225_p1  ;;  %s210_s16 = ssub.s32 %s1409_s9, %s1716_s13 }
   0xa   : > { %p1118_p6 = scmp.ge.s32.totalorder %s1413_s10, 1  ;;  %p213_p7 = scmp.eq.s32.totalorder %s210_s16, 0 }
   0xb   : > { %p1510_p8 = por %p232_p5, %p231_p3  ;;  %p278_p9 = scmp.lt.s32.totalorder %s1413_s10, 3 }
   0xc   : > { %s1516_s18 = scalar_select %p213_p7, %s1401_s29, %s215_s14  }
   0xd   : > { %p279_p10 = pnand %p1118_p6, %p278_p9 }
   0xe   : > { %v1311_v0 = vld [vmem:[%s1701_s2] sm:$0xff] (!%p279_p10)   ;;  %v1415_v1 = vmov (!%p279_p10), 0.0   ;;  %v1312_v2 = vld [vmem:[%s1701_s2 + $0x8] sm:$0xff] (!%p279_p10)   ;;  %vm1416_vm0 = vmmov (!%p279_p10), 0   ;;  %p311_p11 = scmp.lt.s32.totalorder (!%p279_p10), %s1405_s30, 1  ;;  %vm338_vm1 = vcmask (!%p279_p10), 261120   ;;  %v512_v9 = vlaneseq (!%p279_p10) }
   0xf   : > { %282 = sbr.rel (%p279_p10) target bundleno = 1257 (0x4e9), region = 52  ;;  %1174 = vmatprep.subr.bf16.mxu0 (!%p279_p10), %v1415_v1  ;;  %1182 = vmatprep.subr.bf16.mxu1 (!%p279_p10), %v1415_v1  ;;  %v1315_v3 = vld [vmem:[%s1702_s3] sm:$0xff] (!%p279_p10)   ;;  %v1314_v7 = vld [vmem:[%s1700_s1 + $0x8] sm:$0xff] (!%p279_p10)   ;;  %vm383_vm2 = vcmask (!%p279_p10), 125952   ;;  %vm518_vm3 = vcmask (!%p279_p10), 130048   ;;  %vm442_vm4 = vcmask (!%p279_p10), 191488  }
  0x10   : > { %1175 = vmatpush3.bf16.msra.mxu0 (!%p279_p10), %v1311_v0  ;;  %1178 = vmatprep.mubr.msk.bf16.mxu0 (!%p279_p10), %vm1416_vm0, %v1415_v1  ;;  %v1313_v5 = vld [vmem:[%s1700_s1] sm:$0xff] (!%p279_p10)   ;;  %v1316_v8 = vld [vmem:[%s1702_s3 + $0x8] sm:$0xff] (!%p279_p10)   ;;  %v1562_v11 = vshrl.u32 (!%p279_p10), %v512_v9, 7  ;;  %vm581_vm5 = vcmask (!%p279_p10), 1043456   ;;  %vm565_vm6 = vcmask (!%p279_p10), 64512   ;;  %vm981_vm7 = vcmask (!%p279_p10), 195584  }
  0x11   : > { %1176 = vmatprep.subr.bf16.mxu0 (!%p279_p10), %v1415_v1  ;;  %1186 = vmatprep.mubr.msk.bf16.mxu1 (!%p279_p10), %vm1416_vm0, %v1415_v1  ;;  %v510_v17 = vld [vmem:[%s1703_s4] sm:$0xf] (!%p279_p10)  ;;  %s308_s20 = sand.u32 (!%p279_p10), 1, %s1397_s28   ;;  %s1143_s24 = sshll.u32 (!%p279_p10), %s1405_s30, 7 }
  0x12   : > { %1183 = vmatpush3.bf16.msra.mxu1 (!%p279_p10), %v1315_v3  ;;  %v514_v16 = vsub.s32 (!%p279_p10), 0, %v1562_v11  ;;  %v633_v26 = vsub.s32 (!%p279_p10), 1, %v1562_v11  ;;  %v743_v30 = vsub.s32 (!%p279_p10), 2, %v1562_v11  ;;  %v853_v34 = vsub.s32 (!%p279_p10), 3, %v1562_v11  ;;  %s1119_s21 = sshll.u32 (!%p279_p10), %s308_s20, 3  ;;  %s1417_s19 = smov (!%p279_p10), [#allocation4]  }
  0x13   : > { %1184 = vmatprep.subr.bf16.mxu1 (!%p279_p10), %v1415_v1  ;;  %s310_s25 = scalar_lea.vmem (!%p279_p10), [#allocation4], %s1119_s21  ;;  %s1339_s21 = sshll.u32 (!%p279_p10), %s1417_s19, 4  ;;  %s1340_s21 = int_to_ptr.vmem [resolvable:$false] %s1339_s21 }
  0x14   : > { %1177 = vmatpush3.bf16.msra.mxu0 (!%p279_p10), %v1312_v2  ;;  %v515_v19 = vrot.slane (!%p279_p10), %v510_v17, %v514_v16  ;;  %v634_v28 = vrot.slane (!%p279_p10), %v510_v17, %v633_v26  ;;  %v744_v32 = vrot.slane (!%p279_p10), %v510_v17, %v743_v30  ;;  %v854_v36 = vrot.slane (!%p279_p10), %v510_v17, %v853_v34  ;;  %s1341_s22 = scalar_lea.vmem (!%p279_p10), %s1340_s21, 256 }
  0x15   : > { %1190 = vmatprep.subr.bf16.mxu0 (!%p279_p10), %v1415_v1 }
  0x16   : > { %s312_s23 = scalar_select %p311_p11, %s1405_s30, 1  ;;  %1185 = vmatpush3.bf16.msra.mxu1 %v1316_v8 }
  0x17   : > { %1198 = vmatprep.subr.bf16.mxu1 %v1415_v1  ;;  %s1030_s30 = scalar_lea.sflag [#allocation5], %s308_s20 }
  0x18   : > { %s1120_s26 = sshll.u32 %s312_s23, 3 }
  0x19   : > { %s314_s14 = scalar_lea.vmem %s1699_s0, %s1120_s26  ;;  %s1044_s26 = sshll.u32 %s310_s25, 4  ;;  %s1653_s26 = int_to_ptr.vmem [resolvable:$true] %s1044_s26 }
  0x1a   : > { %v320_v4 = vld [vmem:[%s314_s14] sm:$0xff]  ;;  %s1651_s14 = scalar_lea.hbm %s1707_s8, %s1143_s24  ;;  %s1335_s16 = scalar_lea.vmem %s1653_s26, 128 }
  0x1b   : > { %v321_v6 = vpack.c.bf16 %v320_v4, %v320_v4  ;;  %p1336_p12 = scmp.ne.s32.totalorder %s1653_s26, %s1335_s16  ;;  %p1342_p1 = scmp.lt.s32.totalorder %s1653_s26, %s1340_s21 }
  0x1c   : > { %p1343_p2 = scmp.lt.s32.totalorder %s1341_s22, %s1335_s16 }
  0x1d   : > { %1179 = vmatmul.mubr.msk.bf16.vlgmr.msra.gmra.mrb[0].mxu0 %vm338_vm1, %v321_v6  ;;  %1187 = vmatmul.mubr.msk.bf16.vlgmr.msra.gmra.mrb[0].mxu1 %vm338_vm1, %v321_v6  ;;  %p1337_p13 = pnand %p1336_p12, %p1503_p4 }
  0x1e   : > { %1191 = vmatpush3.bf16.msra.mxu0 %v1313_v5  ;;  %1194 = vmatprep.mubr.msk.bf16.mxu0 %vm1416_vm0, %v1415_v1  ;;  %p1344_p3 = por %p1343_p2, %p1342_p1 }
  0x1f   : > { %1192 = vmatprep.subr.bf16.mxu0 %v1415_v1  ;;  %1200 = vmatprep.mubr.msk.bf16.mxu1 %vm1416_vm0, %v1415_v1  ;;  %p1338_p0 = pneg %p1337_p13 }
  0x21   : > { %p1345_p5 = pnand %p1344_p3, %p1338_p0 }
  0x22   : > { %1193 = vmatpush3.bf16.msra.mxu0 %v1314_v7 }
  0x23   : > { %1204 = vmatprep.subr.bf16.mxu0 %v1415_v1 }
  0x25   : > { %1195 = vmatmul.mubr.msk.bf16.vlgmr.msra.gmra.mrb[4].mxu0 %vm338_vm1, %v321_v6 }
  0x26   : > { %1206 = vmatprep.mubr.msk.bf16.mxu0 %vm1416_vm0, %v1415_v1 }
  0xf0   : > { %v376_v10 = vpop.f32.mrb[0].mxu0  ;;  %v435_v39 = vpop.f32.mrb[0].mxu1 }
  0xf1   : > { %v382_v12 = vpack.c.bf16 %v376_v10, %v376_v10  ;;  %v1180_v13 = vpop.f32.mrb[1].mxu0  ;;  %v441_v40 = vpack.c.bf16 %v435_v39, %v435_v39  ;;  %v1188_v41 = vpop.f32.mrb[1].mxu1 }
  0xf2   : > { %v379_v14 = vpop.f32.mrb[2].mxu0  ;;  %v438_v42 = vpop.f32.mrb[2].mxu1 }
  0xf3   : > { %384 = vst.msk [vmem:[#allocation2] sm:$0xf] %vm383_vm2, %v382_v12  ;;  %v1181_v15 = vpop.f32.mrb[3].mxu0  ;;  %v1189_v43 = vpop.f32.mrb[3].mxu1 }
  0xf4   : > { %443 = vst.msk [vmem:[#allocation3] sm:$0xf] %vm442_vm4, %v441_v40 }
  0xf8   : > { %v502_v18 = vpop.f32.mrb[4].mxu0 }
  0xf9   : > { %v1196_v20 = vpop.f32.mrb[5].mxu0  ;;  %v516_v24 = vmul.f32 %v515_v19, %v502_v18  ;;  %v635_v29 = vmul.f32 %v634_v28, %v502_v18  ;;  %v745_v33 = vmul.f32 %v744_v32, %v502_v18  ;;  %v855_v37 = vmul.f32 %v854_v36, %v502_v18 }
  0xfa   : > { %v508_v21 = vld [vmem:[#allocation2] sm:$0xf]  ;;  %v505_v22 = vpop.f32.mrb[6].mxu0 }
  0xfb   : > { %v1197_v23 = vpop.f32.mrb[7].mxu0  ;;  %v523_v25 = vsel %vm518_vm3, %v508_v21, 0  ;;  %v517_v27 = vpack.c.bf16 %v516_v24, %v516_v24  ;;  %v636_v31 = vpack.c.bf16 %v635_v29, %v635_v29  ;;  %v746_v35 = vpack.c.bf16 %v745_v33, %v745_v33  ;;  %v509_v44 = vld [vmem:[#allocation3] sm:$0xf] }
  0xfc   : > { %1199 = vmatpush3.bf16.xpose.msra.mxu1 %v523_v25  ;;  %v856_v38 = vpack.c.bf16 %v855_v37, %v855_v37  ;;  %v1597_v45 = vsel %vm581_vm5, %v509_v44, 0  ;;  %v1317_v44 = vld [vmem:[%s1705_s6] sm:$0xff]  }
  0xfd   : > { %1210 = vmatprep.subr.bf16.mxu1 %v1415_v1  ;;  %1205 = vmatpush3.bf16.msra.mxu0 %v1597_v45 }
  0xfe   : > { %1216 = vmatprep.subr.bf16.mxu0 %v1415_v1 }
 0x103   : > { %1201 = vmatmul.mubr.msk.bf16.vlgmr.msra.gmra.mrb[4].mxu1 %vm518_vm3, %v517_v27 }
 0x104   : > { %1211 = vmatpush3.bf16.xpose.msra.mxu1 %v523_v25  ;;  %1212 = vmatprep.mubr.msk.bf16.mxu1 %vm1416_vm0, %v1415_v1 }
 0x105   : > { %1222 = vmatprep.subr.bf16.mxu1 %v1415_v1 }
 0x10b   : > { %1213 = vmatmul.mubr.msk.bf16.vlgmr.msra.gmra.mrb[8].mxu1 %vm518_vm3, %v636_v31 }
 0x10c   : > { %1223 = vmatpush3.bf16.xpose.msra.mxu1 %v523_v25  ;;  %1224 = vmatprep.mubr.msk.bf16.mxu1 %vm1416_vm0, %v1415_v1 }
 0x10d   : > { %1234 = vmatprep.subr.bf16.mxu1 %v1415_v1 }
 0x113   : > { %1225 = vmatmul.mubr.msk.bf16.vlgmr.msra.gmra.mrb[12].mxu1 %vm518_vm3, %v746_v35 }
 0x114   : > { %1235 = vmatpush3.bf16.xpose.msra.mxu1 %v523_v25  ;;  %1236 = vmatprep.mubr.msk.bf16.mxu1 %vm1416_vm0, %v1415_v1 }
 0x115   : > { %1246 = vmatprep.subr.bf16.mxu1 %v1415_v1 }
 0x11b   : > { %1237 = vmatmul.mubr.msk.bf16.vlgmr.msra.gmra.mrb[16].mxu1 %vm518_vm3, %v856_v38 }
 0x11c   : > { %1250 = vmatprep.mubr.msk.bf16.mxu1 %vm1416_vm0, %v1415_v1  ;;  %1247 = vmatpush3.bf16.msra.mxu1 %v1317_v44 }
 0x11d   : > { %1248 = vmatprep.subr.bf16.mxu1 %v1415_v1 }
 0x1d6   : > { %v559_v46 = vpop.f32.mrb[4].mxu1 }
 0x1d7   : > { %v1202_v47 = vpop.f32.mrb[5].mxu1  ;;  %v566_v48 = vsel %vm565_vm6, %v559_v46, -inf }
 0x1d8   : > { %567 = vmax.xlane.f32.xlu0 %v566_v48  ;;  %v562_v49 = vpop.f32.mrb[6].mxu1 }
 0x1d9   : > { %v1203_v50 = vpop.f32.mrb[7].mxu1  ;;  %v511_v49 = vld [vmem:[%s1704_s5] sm:$0xf] }
 0x1de   : > { %v674_v51 = vpop.f32.mrb[8].mxu1 }
 0x1df   : > { %v1214_v52 = vpop.f32.mrb[9].mxu1  ;;  %v680_v53 = vsel %vm565_vm6, %v674_v51, -inf }
 0x1e0   : > { %681 = vmax.xlane.f32.xlu0 %v680_v53  ;;  %v677_v54 = vpop.f32.mrb[10].mxu1  ;;  %v628_v52 = vrot.slane %v511_v49, %v514_v16 }
 0x1e1   : > { %v1215_v55 = vpop.f32.mrb[11].mxu1 }
 0x1e6   : > { %v784_v56 = vpop.f32.mrb[12].mxu1 }
 0x1e7   : > { %v1226_v57 = vpop.f32.mrb[13].mxu1  ;;  %v790_v58 = vsel %vm565_vm6, %v784_v56, -inf }
 0x1e8   : > { %791 = vmax.xlane.f32.xlu1 %v790_v58  ;;  %v787_v59 = vpop.f32.mrb[14].mxu1 }
 0x1e9   : > { %v1227_v60 = vpop.f32.mrb[15].mxu1 }
 0x1ea   : > { %v848_v60 = vrot.slane %v511_v49, %v743_v30  ;;  %v1138_v30 = vld [vmem:[%s1706_s7] ss:$0 sm:$0xff] }
 0x1ee   : > { %v894_v61 = vpop.f32.mrb[16].mxu1 }
 0x1ef   : > { %v1238_v62 = vpop.f32.mrb[17].mxu1  ;;  %v900_v63 = vsel %vm565_vm6, %v894_v61, -inf }
 0x1f0   : > { %901 = vmax.xlane.f32.xlu1 %v900_v63  ;;  %v897_v0 = vpop.f32.mrb[18].mxu1 }
 0x1f1   : > { %v1239_v2 = vpop.f32.mrb[19].mxu1 }
 0x265   : > { %v568_v3 = vpop.xlane.xlu0 %567 }
 0x266   : > { %v569_v4 = vsub.f32 %v559_v46, %v568_v3  ;;  %v1318_v46 = vld [vmem:[%s1705_s6 + $0x8] ss:$0 sps:$4 sm:$0xff]  }
 0x268   : > { %v570_v5 = vmul.f32 1.442695, %v569_v4 }
 0x26a   : > { %1319 = vpow2.f32 %v570_v5 }
 0x26d   : > { %v682_v6 = vpop.xlane.xlu0 %681 }
 0x26e   : > { %v683_v7 = vsub.f32 %v674_v51, %v682_v6 }
 0x270   : > { %v684_v8 = vmul.f32 1.442695, %v683_v7 }
 0x272   : > { %1321 = vpow2.f32 %v684_v8 }
 0x274   : > { %v1320_v9 = vpop.eup %1319 }
 0x275   : > { %v792_v10 = vpop.xlane.xlu1 %791  ;;  %v572_v12 = vsel %vm565_vm6, %v1320_v9, 0.0 }
 0x276   : > { %v793_v13 = vsub.f32 %v784_v56, %v792_v10  ;;  %573 = vadd.xlane.f32.xlu0 %v572_v12 }
 0x278   : > { %v794_v14 = vmul.f32 1.442695, %v793_v13 }
 0x27a   : > { %1323 = vpow2.f32 %v794_v14 }
 0x27c   : > { %v1322_v15 = vpop.eup %1321 }
 0x27d   : > { %v902_v17 = vpop.xlane.xlu1 %901  ;;  %v686_v18 = vsel %vm565_vm6, %v1322_v15, 0.0 }
 0x27e   : > { %v903_v19 = vsub.f32 %v894_v61, %v902_v17  ;;  %687 = vadd.xlane.f32.xlu1 %v686_v18 }
 0x280   : > { %v904_v20 = vmul.f32 1.442695, %v903_v19 }
 0x282   : > { %1325 = vpow2.f32 %v904_v20 }
 0x284   : > { %v1324_v21 = vpop.eup %1323 }
 0x285   : > { %v796_v22 = vsel %vm565_vm6, %v1324_v21, 0.0 }
 0x286   : > { %797 = vadd.xlane.f32.xlu0 %v796_v22 }
 0x28c   : > { %v1326_v23 = vpop.eup %1325 }
 0x28d   : > { %v906_v24 = vsel %vm565_vm6, %v1326_v23, 0.0 }
 0x28e   : > { %907 = vadd.xlane.f32.xlu1 %v906_v24 }
 0x303   : > { %v574_v25 = vpop.xlane.xlu0 %573 }
 0x304   : > { %1327 = vrcp.f32 %v574_v25 }
 0x30b   : > { %v688_v27 = vpop.xlane.xlu1 %687 }
 0x30c   : > { %1329 = vrcp.f32 %v688_v27 }
 0x30e   : > { %v1328_v28 = vpop.eup %1327 }
 0x30f   : > { %v576_v29 = vmul.f32 %v1328_v28, %v1320_v9 }
 0x311   : > { %v577_v31 = vpack.c.bf16 %v576_v29, %v576_v29 }
 0x313   : > { %1207 = vmatmul.mubr.msk.bf16.vlgmr.msra.gmra.mrb[8].mxu0 %vm565_vm6, %v577_v31  ;;  %v798_v32 = vpop.xlane.xlu0 %797 }
 0x314   : > { %1217 = vmatpush3.bf16.msra.mxu0 %v1597_v45  ;;  %1331 = vrcp.f32 %v798_v32  ;;  %1218 = vmatprep.mubr.msk.bf16.mxu0 %vm1416_vm0, %v1415_v1 }
 0x315   : > { %1228 = vmatprep.subr.bf16.mxu0 %v1415_v1 }
 0x316   : > { %v1330_v33 = vpop.eup %1329 }
 0x317   : > { %v690_v35 = vmul.f32 %v1330_v33, %v1322_v15 }
 0x319   : > { %v691_v36 = vpack.c.bf16 %v690_v35, %v690_v35 }
 0x31b   : > { %1219 = vmatmul.mubr.msk.bf16.vlgmr.msra.gmra.mrb[12].mxu0 %vm565_vm6, %v691_v36  ;;  %v908_v37 = vpop.xlane.xlu1 %907 }
 0x31c   : > { %1229 = vmatpush3.bf16.msra.mxu0 %v1597_v45  ;;  %1333 = vrcp.f32 %v908_v37  ;;  %1230 = vmatprep.mubr.msk.bf16.mxu0 %vm1416_vm0, %v1415_v1 }
 0x31d   : > { %1240 = vmatprep.subr.bf16.mxu0 %v1415_v1 }
 0x31e   : > { %v1332_v38 = vpop.eup %1331 }
 0x31f   : > { %v800_v39 = vmul.f32 %v1332_v38, %v1324_v21 }
 0x321   : > { %v801_v40 = vpack.c.bf16 %v800_v39, %v800_v39 }
 0x323   : > { %1231 = vmatmul.mubr.msk.bf16.vlgmr.msra.gmra.mrb[16].mxu0 %vm565_vm6, %v801_v40 }
 0x324   : > { %1241 = vmatpush3.bf16.msra.mxu0 %v1597_v45  ;;  %1242 = vmatprep.mubr.msk.bf16.mxu0 %vm1416_vm0, %v1415_v1  ;;  %v986_v45 = vsel %vm581_vm5, %v1318_v46, 0  ;;  %v738_v1 = vrot.slane %v511_v49, %v633_v26  ;;  %v958_v26 = vrot.slane %v511_v49, %v853_v34 }
 0x325   : > { %1249 = vmatpush3.bf16.msra.mxu1 %v986_v45 }
 0x326   : > { %v1334_v41 = vpop.eup %1333 }
 0x327   : > { %v910_v42 = vmul.f32 %v1334_v41, %v1326_v23 }
 0x329   : > { %v911_v43 = vpack.c.bf16 %v910_v42, %v910_v42 }
 0x32b   : > { %1243 = vmatmul.mubr.msk.bf16.vlgmr.msra.gmra.mrb[20].mxu0 %vm565_vm6, %v911_v43 }
 0x3e6   : > { %v619_v47 = vpop.f32.mrb[8].mxu0 }
 0x3e7   : > { %v1208_v48 = vpop.f32.mrb[9].mxu0  ;;  %v629_v54 = vmul.f32 %v628_v52, %v619_v47 }
 0x3e8   : > { %v622_v50 = vpop.f32.mrb[10].mxu0 }
 0x3e9   : > { %v1209_v51 = vpop.f32.mrb[11].mxu0 }
 0x3ee   : > { %v729_v53 = vpop.f32.mrb[12].mxu0 }
 0x3ef   : > { %v739_v55 = vmul.f32 %v738_v1, %v729_v53  ;;  %v1220_v56 = vpop.f32.mrb[13].mxu0 }
 0x3f0   : > { %v732_v57 = vpop.f32.mrb[14].mxu0 }
 0x3f1   : > { %v740_v58 = vadd.f32 %v739_v55, %v629_v54  ;;  %v1221_v59 = vpop.f32.mrb[15].mxu0 }
 0x3f6   : > { %v839_v61 = vpop.f32.mrb[16].mxu0 }
 0x3f7   : > { %v849_v62 = vmul.f32 %v848_v60, %v839_v61  ;;  %v1232_v63 = vpop.f32.mrb[17].mxu0 }
 0x3f8   : > { %v842_v0 = vpop.f32.mrb[18].mxu0 }
 0x3f9   : > { %v850_v16 = vadd.f32 %v849_v62, %v740_v58  ;;  %v1233_v2 = vpop.f32.mrb[19].mxu0 }
 0x3fe   : > { %v949_v3 = vpop.f32.mrb[20].mxu0 }
 0x3ff   : > { %v959_v4 = vmul.f32 %v958_v26, %v949_v3  ;;  %v1244_v5 = vpop.f32.mrb[21].mxu0 }
 0x400   : > { %v952_v6 = vpop.f32.mrb[22].mxu0 }
 0x401   : > { %v960_v7 = vadd.f32 %v959_v4, %v850_v16  ;;  %v1245_v8 = vpop.f32.mrb[23].mxu0 }
 0x403   : > { %v961_v9 = vpack.c.bf16 %v960_v7, %v960_v7 }
 0x405   : > { %1251 = vmatmul.mubr.msk.bf16.vlgmr.msra.gmra.mrb[20].mxu1 %vm981_vm7, %v961_v9 }
 0x4d8   : > { %v1022_v11 = vpop.f32.mrb[20].mxu1 }
 0x4d9   : > { %v1023_v34 = vadd.f32 %v1138_v30, %v1022_v11  ;;  %v1252_v10 = vpop.f32.mrb[21].mxu1 }
 0x4da   : > { %v1025_v12 = vpop.f32.mrb[22].mxu1 }
 0x4db   : > { %v1253_v13 = vpop.f32.mrb[23].mxu1  ;;  %1028 = vst.msk [vmem:[%s310_s25] sm:$0xff] %vm338_vm1, %v1023_v34 }
 0x4dc   : > { %1348 = shalt.err (!%p1345_p5)
}
 0x4dd   : > { %s1349_s20 = scalar_lea.hbm %s1651_s14, 128  ;;  %s1353_s25 = scalar_lea.hbm %s1707_s8, 256 }
 0x4de   : > { %p1350_p6 = scmp.ne.s32.totalorder %s1651_s14, %s1349_s20  ;;  %p1354_p10 = scmp.lt.u32.totalorder %s1651_s14, %s1707_s8 }
 0x4df   : > { %p1355_p11 = scmp.lt.u32.totalorder %s1353_s25, %s1349_s20  ;;  %p1357_p13 = scmp.lt.u32.totalorder %s1349_s20, %s1651_s14 }
 0x4e0   : > { %p1351_p7 = pnand %p1350_p6, %p1503_p4 }
 0x4e1   : > { %p1356_p12 = por %p1355_p11, %p1354_p10 }
 0x4e2   : > { %p1352_p9 = pneg %p1351_p7 }
 0x4e3   : > { %p1358_p0 = por %p1357_p13, %p1356_p12 }
 0x4e5   : > { %p1359_p1 = pnand %p1358_p0, %p1352_p9 }
 0x4e7   : > { %1362 = shalt.err (!%p1359_p1)
}
 0x4e8   : > { %1254 = dma.vmem_to_hbm [thread:$0]  (%p1503_p4), %s1653_s26, 128, %s1651_s14, %s1030_s30  }
 0x4e9 PF: > { %p1260_p2 = scmp.ge.s32.totalorder %s1413_s10, 2  ;;  %s1056_s16 = sand.u32 1, %s1393_s27  }
 0x4ea   : > { %s1057_s19 = scalar_lea.sflag [#allocation5], %s1056_s16 }
 0x4eb   : > { %p1257_p3 = pnand %p1260_p2, %p1510_p8 }
 0x4ed   : > { %1388 = dma.done.wait (!%p1257_p3), %s1057_s19, 128  }
 0x4ee   : > { %1390 = vsyncadd (!%p1257_p3), %s1057_s19, 4294967168  ;;  %s21_s10 = sadd.s32 1, %s1413_s10   ;;  %s1710_s27 = smov %s1397_s28 }
 0x4ef   : > { %p18_p5 = scmp.ge.s32.totalorder %s21_s10, 4   ;;  %s1711_s28 = smov %s1401_s29 }
 0x4f0   : > { %s1712_s29 = smov %s1516_s18  ;;  %s1713_s30 = smov %s1409_s9 }
 0x4f1   : > { %s1714_s9 = smov %s1716_s13  ;;  %20 = sbr.rel (!%p18_p5) target bundleno = 4 (0x4), region = 92 }
 0x4f8   :  { %1062 = vsyncpa [#allocation5], 1 }
 0x4f9   :  { %1064 = vsyncpa [#allocation5 + $0x1], 1 }

</bundles_post_ra>
